<compile_context>
chip_gen: v7x
topology: tpu7x:2x2x1
jax: 0.10.0
libtpu: 0.0.40
codegen_flags: <defaults>
</compile_context>

<pallas_src>
import functools
import math

import jax
import jax.numpy as jnp
import numpy as np
from jax.experimental import pallas as pl
from jax.experimental.pallas import tpu as pltpu


def _round_up(x, m):
    return ((x + m - 1) // m) * m


def _vmem_capacity_bytes():
    """Physical per-TensorCore VMEM (64 MiB on v7x, 128 MiB on v5e/v6e)."""
    try:
        cap = int(pltpu.get_tpu_info().vmem_capacity_bytes)
        if cap > 0:
            return cap
    except Exception:
        pass
    return 64 * 1024 * 1024      # conservative default (v7x per-TC)


def _scatter_tile(dst_ref, feat_ref, acc_ref, node_base, compute_dtype):
    """acc[n, f] += sum_e (dst[e] == node_base + n) * feat[e, f]."""
    dst = dst_ref[...]                                   # (1, TE) int32
    feat = feat_ref[...]                                 # (TE, TF)
    tn = acc_ref.shape[0]
    te = dst.shape[1]

    # one_hot in (node, edge) orientation -> standard (TN,TE)@(TE,TF) MXU
    # matmul contracting the edge axis (no LHS transpose).
    node_ids = node_base + jax.lax.broadcasted_iota(jnp.int32, (tn, te), 0)
    one_hot = (node_ids == dst).astype(compute_dtype)    # (TN, TE)

    acc_ref[...] += jax.lax.dot_general(
        one_hot, feat.astype(compute_dtype),
        (((1,), (0,)), ((), ())),                        # contract edge axis
        preferred_element_type=jnp.float32,
    )


def _edgewise_kernel_f32(first_ref, count_ref, dst_ref, feat_ref, out_ref, *,
                         tile_n, factor, compute_dtype):
    """f32 output: accumulate directly into the resident output block."""
    n = pl.program_id(0)
    v = pl.program_id(2)

    @pl.when(v == 0)
    def _():
        out_ref[...] = jnp.zeros_like(out_ref)

    # Skip edge tiles this node tile never touches (block-sparse schedule).
    @pl.when(v < count_ref[n])
    def _():
        _scatter_tile(dst_ref, feat_ref, out_ref, n * tile_n, compute_dtype)

    if factor != 1.0:
        @pl.when(v == pl.num_programs(2) - 1)
        def _():
            out_ref[...] = out_ref[...] * factor


def _edgewise_kernel_cast(first_ref, count_ref, dst_ref, feat_ref, out_ref,
                          acc_ref, *, tile_n, factor, compute_dtype):
    """non-f32 output: f32 VMEM accumulator, scale/cast at the last edge visit."""
    n = pl.program_id(0)
    v = pl.program_id(2)

    @pl.when(v == 0)
    def _():
        acc_ref[...] = jnp.zeros_like(acc_ref)

    @pl.when(v < count_ref[n])
    def _():
        _scatter_tile(dst_ref, feat_ref, acc_ref, n * tile_n, compute_dtype)

    @pl.when(v == pl.num_programs(2) - 1)
    def _():
        out_ref[...] = (acc_ref[...] * factor).astype(out_ref.dtype)


def edgewise_reduce(edge_feat, edge_dst, num_nodes,
                    avg_num_neighbors=None, normalize_edge_reduce=True,
                    tile_e=512, tile_n=None, tile_f=None):
    """Scatter-sum edge features into nodes, scaled by 1/sqrt(avg_num_neighbors).

    Matches EdgewiseReduce(reduce='sum') forward.  The edge schedule (sorted
    edge order + per-node-tile edge-tile ranges) is computed on the host, so
    this wrapper is meant to be called eagerly (graph setup), not inside jit.
    """
    # TODO(synk): only reduce='sum' is implemented; 'mean'/'min'/'max' are not.
    E, F = edge_feat.shape
    out_dtype = edge_feat.dtype

    factor = 1.0
    if normalize_edge_reduce and avg_num_neighbors is not None:
        factor = 1.0 / math.sqrt(avg_num_neighbors)

    # bf16 operands on bf16-native MXUs when features are already bf16;
    # exact f32 path otherwise (accumulation is always f32).
    # TODO(synk): optional bf16 hi/lo-split fast path for f32 inputs on v6e/v7x.
    compute_dtype = jnp.bfloat16 if out_dtype == jnp.bfloat16 else jnp.float32
    comp_bytes = jnp.dtype(compute_dtype).itemsize
    feat_bytes = jnp.dtype(out_dtype).itemsize
    acc_is_out = (out_dtype == jnp.float32)

    # ---- tiling choices -----------------------------------------------------
    vmem_cap = _vmem_capacity_bytes()
    vmem_budget = int(vmem_cap * 0.6)      # leave headroom for compiler scratch

    # Feature (lane) dim: pad to a multiple of 128.  Collapse to a single block
    # when small (one-hot built exactly once per edge tile); otherwise 256
    # (native MXU result width on v6e/v7x), 128 only if F forces it.
    f_pad = _round_up(F, 128)
    if tile_f is None:
        if f_pad <= 512:
            tile_f = f_pad
        elif f_pad % 256 == 0:
            tile_f = 256
        else:
            tile_f = 128
    tile_f = min(tile_f, f_pad)
    if f_pad % tile_f != 0:
        tile_f = 128

    # Node (sublane) dim: tiled so VMEM is bounded for any graph size and v7x
    # gets a second "parallel" grid axis.
    n_pad8 = _round_up(max(num_nodes, 1), 8)
    if tile_n is None:
        tile_n = 1024
    tile_n = _round_up(min(tile_n, n_pad8), 8)
    n_out_pad = _round_up(n_pad8, tile_n)
    n_tiles = n_out_pad // tile_n

    # Edge (contraction) dim: multiple of 128, >=512 preferred for MXU depth,
    # bounded so the full per-step working set fits the VMEM budget.
    fixed_bytes = (2 * tile_n * tile_f * 4                       # out block (x2 bufs)
                   + (0 if acc_is_out else tile_n * tile_f * 4)  # f32 scratch acc
                   + tile_n * tile_f * 4)                        # dot-result temp
    per_edge_bytes = (2 * tile_f * feat_bytes    # feat double-buffer
                      + 2 * 8 * 4                # dst row x2 (sublane-padded (8,TE))
                      + tile_n * 4               # iota / compare temporary
                      + tile_n * comp_bytes)     # one-hot operand
    max_te = (vmem_budget - fixed_bytes) // per_edge_bytes
    max_te = max(128, (max_te // 128) * 128)
    tile_e = min(_round_up(max(tile_e, 128), 128), max_te,
                 _round_up(max(E, 1), 128))
    e_pad = _round_up(max(E, 1), tile_e)

    vmem_est = fixed_bytes + per_edge_bytes * tile_e
    # Always set the limit (>= every generation's scoped default) and cap it at
    # 90% of the physical per-core VMEM so it is legal on v7x (64 MiB).
    vmem_limit = int(min(max(vmem_est * 3 // 2, 32 * 1024 * 1024),
                         vmem_cap * 9 // 10))

    # ---- host-side edge schedule (block-sparse skip) ------------------------
    dst_np = np.asarray(jax.device_get(edge_dst)).astype(np.int32).reshape(-1)
    order_np = np.argsort(dst_np, kind="stable")
    dst_sorted_np = dst_np[order_np]

    node_starts = np.arange(n_tiles, dtype=np.int64) * tile_n
    lo = np.searchsorted(dst_sorted_np, node_starts, side="left")
    hi = np.searchsorted(dst_sorted_np,
                         np.minimum(node_starts + tile_n, num_nodes),
                         side="left")
    has_edges = hi > lo
    first_tile = np.where(has_edges, lo // tile_e, 0).astype(np.int32)
    last_tile = np.where(has_edges, (np.maximum(hi, 1) - 1) // tile_e, 0)
    count_tile = np.where(has_edges, last_tile - first_tile + 1, 0).astype(np.int32)
    max_visits = max(int(count_tile.max()) if count_tile.size else 0, 1)

    # ---- pad inputs (padded edges: dst = -1 -> all-zero one-hot column) -----
    # TODO(synk): the explicit zero-pad of the feature tail is one extra E*F
    #             HBM pass; it could be replaced by passing the true E and
    #             masking the tail one-hot columns / feat rows in-kernel.
    feat_sorted = jnp.take(edge_feat, jnp.asarray(order_np, dtype=jnp.int32),
                           axis=0)
    feat_p = jnp.zeros((e_pad, f_pad), out_dtype).at[:E, :F].set(feat_sorted)
    dst_row = jnp.full((1, e_pad), -1, jnp.int32)
    dst_row = dst_row.at[0, :E].set(jnp.asarray(dst_sorted_np))

    first_tile_dev = jnp.asarray(first_tile)
    count_tile_dev = jnp.asarray(count_tile)

    # ---- BlockSpecs / index maps (scalar-prefetch refs are trailing args) ---
    def _edge_tile(n, v, first_ref, count_ref):
        # Clamp so fully-skipped visits reuse the previous block (no extra DMA).
        return first_ref[n] + jnp.minimum(v, jnp.maximum(count_ref[n] - 1, 0))

    def dst_map(n, f, v, first_ref, count_ref):
        return (0, _edge_tile(n, v, first_ref, count_ref))

    def feat_map(n, f, v, first_ref, count_ref):
        return (_edge_tile(n, v, first_ref, count_ref), f)

    def out_map(n, f, v, first_ref, count_ref):
        return (n, f)

    if acc_is_out:
        kernel = functools.partial(_edgewise_kernel_f32, tile_n=tile_n,
                                   factor=factor, compute_dtype=compute_dtype)
        scratch_shapes = []
    else:
        kernel = functools.partial(_edgewise_kernel_cast, tile_n=tile_n,
                                   factor=factor, compute_dtype=compute_dtype)
        scratch_shapes = [pltpu.VMEM((tile_n, tile_f), jnp.float32)]

    out_padded = pl.pallas_call(
        kernel,
        out_shape=jax.ShapeDtypeStruct((n_out_pad, f_pad), out_dtype),
        grid_spec=pltpu.PrefetchScalarGridSpec(
            num_scalar_prefetch=2,
            grid=(n_tiles, f_pad // tile_f, max_visits),
            in_specs=[
                pl.BlockSpec((1, tile_e), dst_map),         # sorted edge_dst row
                pl.BlockSpec((tile_e, tile_f), feat_map),   # sorted edge features
            ],
            out_specs=pl.BlockSpec((tile_n, tile_f), out_map),
            scratch_shapes=scratch_shapes,
        ),
        compiler_params=pltpu.CompilerParams(
            # node & feature tiles are independent (megacore-shardable on v7x);
            # the edge-visit axis is the reduction.
            dimension_semantics=("parallel", "parallel", "arbitrary"),
            vmem_limit_bytes=vmem_limit,
        ),
    )(first_tile_dev, count_tile_dev, dst_row, feat_p)

    return out_padded[:num_nodes, :F]


if __name__ == "__main__":
    # Small synthetic graph consistent with the module's forward:
    #   N atoms, E edges, per-edge feature dim F.
    key = jax.random.PRNGKey(0)
    k_feat, k_dst, k_feat2, k_dst2 = jax.random.split(key, 4)

    # --- test 1: small f32 graph (single node tile, single edge tile) -------
    N_NODES, N_EDGES, F_DIM = 8, 64, 32
    AVG_NUM_NEIGHBORS = float(N_EDGES) / float(N_NODES)

    edge_feat = jax.random.normal(k_feat, (N_EDGES, F_DIM), dtype=jnp.float32)
    edge_dst = jax.random.randint(k_dst, (N_EDGES,), 0, N_NODES, dtype=jnp.int32)

    out = edgewise_reduce(edge_feat, edge_dst, N_NODES,
                          avg_num_neighbors=AVG_NUM_NEIGHBORS,
                          normalize_edge_reduce=True)
    out = jax.block_until_ready(out)

    ref = jax.ops.segment_sum(edge_feat, edge_dst, num_segments=N_NODES)
    ref = ref * (1.0 / math.sqrt(AVG_NUM_NEIGHBORS))
    np.testing.assert_allclose(np.asarray(out), np.asarray(ref),
                               rtol=1e-5, atol=1e-5)

    # --- test 2: multi node-tile / multi edge-tile (block-sparse skip path) --
    N2, E2, F2 = 300, 1024, 96
    feat2 = jax.random.normal(k_feat2, (E2, F2), dtype=jnp.float32)
    dst2 = jax.random.randint(k_dst2, (E2,), 0, N2, dtype=jnp.int32)
    out2 = edgewise_reduce(feat2, dst2, N2, avg_num_neighbors=E2 / N2,
                           tile_n=64, tile_e=128)
    out2 = jax.block_until_ready(out2)
    ref2 = jax.ops.segment_sum(feat2, dst2, num_segments=N2)
    ref2 = ref2 * (1.0 / math.sqrt(E2 / N2))
    np.testing.assert_allclose(np.asarray(out2), np.asarray(ref2),
                               rtol=1e-5, atol=1e-4)

    # --- test 3: bf16 path (f32 scratch accumulator + cast at finalize) -----
    feat_bf16 = edge_feat.astype(jnp.bfloat16)
    out_bf16 = edgewise_reduce(feat_bf16, edge_dst, N_NODES,
                               avg_num_neighbors=AVG_NUM_NEIGHBORS)
    out_bf16 = jax.block_until_ready(out_bf16)
    ref_bf16 = jax.ops.segment_sum(feat_bf16.astype(jnp.float32), edge_dst,
                                   num_segments=N_NODES)
    ref_bf16 = ref_bf16 * (1.0 / math.sqrt(AVG_NUM_NEIGHBORS))
    np.testing.assert_allclose(np.asarray(out_bf16.astype(jnp.float32)),
                               np.asarray(ref_bf16), rtol=2e-2, atol=2e-2)

    print("KERNEL_OK")
</pallas_src>

<mosaic_0001>
module attributes {stable_mosaic.version = 11 : i64} {
  func.func @_edgewise_kernel_f32(%arg0: i32, %arg1: i32, %arg2: i32, %arg3: memref<1xi32, #tpu.memory_space<smem>>, %arg4: memref<1xi32, #tpu.memory_space<smem>>, %arg5: memref<1x128xi32, #tpu.memory_space<vmem>>, %arg6: memref<128x128xf32, #tpu.memory_space<vmem>>, %arg7: memref<8x128xf32, #tpu.memory_space<vmem>>) attributes {dimension_semantics = [#tpu.dimension_semantics<parallel>, #tpu.dimension_semantics<parallel>, #tpu.dimension_semantics<arbitrary>], iteration_bounds = array<i64: 1, 1, 1>, scalar_prefetch = 2 : i64, scratch_operands = 0 : i64, tpu.core_type = #tpu.core_type<tc>, window_params = [{transform_indices = @transform_0, window_bounds = array<i64: 1, 128>}, {transform_indices = @transform_1, window_bounds = array<i64: 128, 128>}, {transform_indices = @transform_2, window_bounds = array<i64: 8, 128>}]} {
    %c0_i32 = arith.constant 0 : i32
    %0 = arith.cmpi eq, %arg2, %c0_i32 : i32
    %1 = arith.extui %0 : i1 to i32
    %c0_i32_0 = arith.constant 0 : i32
    %2 = arith.cmpi ne, %1, %c0_i32_0 : i32
    scf.if %2 {
      %cst = arith.constant 0.000000e+00 : f32
      %11 = vector.broadcast %cst : f32 to vector<8x128xf32>
      %c0 = arith.constant 0 : index
      %c0_4 = arith.constant 0 : index
      %12 = vector.load %arg7[%c0, %c0_4] : memref<8x128xf32, #tpu.memory_space<vmem>>, vector<8x128xf32>
      tpu.vector_store %arg7[%c0, %c0_4], %11 {strides = array<i32>} : memref<8x128xf32, #tpu.memory_space<vmem>>, vector<8x128xf32>,
    } else {
    }
    %3 = arith.index_cast %arg0 : i32 to index
    %4 = memref.load %arg4[%3] : memref<1xi32, #tpu.memory_space<smem>>
    %5 = arith.cmpi slt, %arg2, %4 : i32
    %6 = arith.extui %5 : i1 to i32
    %c0_i32_1 = arith.constant 0 : i32
    %7 = arith.cmpi ne, %6, %c0_i32_1 : i32
    scf.if %7 {
      %c8_i32 = arith.constant 8 : i32
      %11 = arith.muli %arg0, %c8_i32 : i32
      %c0 = arith.constant 0 : index
      %c0_4 = arith.constant 0 : index
      %12 = vector.load %arg5[%c0, %c0_4] : memref<1x128xi32, #tpu.memory_space<vmem>>, vector<1x128xi32>
      %c0_5 = arith.constant 0 : index
      %c0_6 = arith.constant 0 : index
      %13 = vector.load %arg6[%c0_5, %c0_6] : memref<128x128xf32, #tpu.memory_space<vmem>>, vector<128x128xf32>
      %14 = tpu.iota {dimensions = array<i32: 0>} : vector<8x128xi32>
      %15 = vector.broadcast %11 : i32 to vector<8x128xi32>
      %16 = arith.addi %15, %14 : vector<8x128xi32>
      %17 = vector.broadcast %12 : vector<1x128xi32> to vector<8x128xi32>
      %18 = arith.cmpi eq, %16, %17 : vector<8x128xi32>
      %19 = arith.extui %18 : vector<8x128xi1> to vector<8x128xi32>
      %20 = arith.sitofp %19 : vector<8x128xi32> to vector<8x128xf32>
      %c0_7 = arith.constant 0 : index
      %c0_8 = arith.constant 0 : index
      %21 = vector.load %arg7[%c0_7, %c0_8] : memref<8x128xf32, #tpu.memory_space<vmem>>, vector<8x128xf32>
      %cst = arith.constant dense<0.000000e+00> : vector<8x128xf32>
      %22 = tpu.matmul %20, %13, %cst {dimension_numbers = #tpu.dot_dimension_numbers<[1], [0], [0], [1], [0, 0, 1, 1], [], []>} : vector<8x128xf32>, vector<128x128xf32>, vector<8x128xf32> -> vector<8x128xf32>
      %23 = arith.addf %21, %22 : vector<8x128xf32>
      %c0_9 = arith.constant 0 : index
      %c0_10 = arith.constant 0 : index
      %24 = vector.load %arg7[%c0_9, %c0_10] : memref<8x128xf32, #tpu.memory_space<vmem>>, vector<8x128xf32>
      tpu.vector_store %arg7[%c0_9, %c0_10], %23 {strides = array<i32>} : memref<8x128xf32, #tpu.memory_space<vmem>>, vector<8x128xf32>,
    } else {
    }
    %c0_i32_2 = arith.constant 0 : i32
    %8 = arith.cmpi eq, %arg2, %c0_i32_2 : i32
    %9 = arith.extui %8 : i1 to i32
    %c0_i32_3 = arith.constant 0 : i32
    %10 = arith.cmpi ne, %9, %c0_i32_3 : i32
    scf.if %10 {
      %c0 = arith.constant 0 : index
      %c0_4 = arith.constant 0 : index
      %11 = vector.load %arg7[%c0, %c0_4] : memref<8x128xf32, #tpu.memory_space<vmem>>, vector<8x128xf32>
      %cst = arith.constant 0.353553385 : f32
      %12 = vector.broadcast %cst : f32 to vector<8x128xf32>
      %13 = arith.mulf %11, %12 : vector<8x128xf32>
      %c0_5 = arith.constant 0 : index
      %c0_6 = arith.constant 0 : index
      %14 = vector.load %arg7[%c0_5, %c0_6] : memref<8x128xf32, #tpu.memory_space<vmem>>, vector<8x128xf32>
      tpu.vector_store %arg7[%c0_5, %c0_6], %13 {strides = array<i32>} : memref<8x128xf32, #tpu.memory_space<vmem>>, vector<8x128xf32>,
    } else {
    }
    return
  }
  func.func @transform_0(%arg0: i32, %arg1: i32, %arg2: i32, %arg3: memref<1xi32, #tpu.memory_space<smem>>, %arg4: memref<1xi32, #tpu.memory_space<smem>>) -> (i32, i32) {
    %0 = arith.index_cast %arg0 : i32 to index
    %1 = memref.load %arg3[%0] : memref<1xi32, #tpu.memory_space<smem>>
    %2 = arith.index_cast %arg0 : i32 to index
    %3 = memref.load %arg4[%2] : memref<1xi32, #tpu.memory_space<smem>>
    %c1_i32 = arith.constant 1 : i32
    %4 = arith.subi %3, %c1_i32 : i32
    %c0_i32 = arith.constant 0 : i32
    %5 = arith.maxsi %4, %c0_i32 : i32
    %6 = arith.minsi %arg2, %5 : i32
    %7 = arith.addi %1, %6 : i32
    %c0_i32_0 = arith.constant 0 : i32
    %c0_i32_1 = arith.constant 0 : i32
    return %c0_i32_0, %7 : i32, i32
  }
  func.func @transform_1(%arg0: i32, %arg1: i32, %arg2: i32, %arg3: memref<1xi32, #tpu.memory_space<smem>>, %arg4: memref<1xi32, #tpu.memory_space<smem>>) -> (i32, i32) {
    %0 = arith.index_cast %arg0 : i32 to index
    %1 = memref.load %arg3[%0] : memref<1xi32, #tpu.memory_space<smem>>
    %2 = arith.index_cast %arg0 : i32 to index
    %3 = memref.load %arg4[%2] : memref<1xi32, #tpu.memory_space<smem>>
    %c1_i32 = arith.constant 1 : i32
    %4 = arith.subi %3, %c1_i32 : i32
    %c0_i32 = arith.constant 0 : i32
    %5 = arith.maxsi %4, %c0_i32 : i32
    %6 = arith.minsi %arg2, %5 : i32
    %7 = arith.addi %1, %6 : i32
    %c0_i32_0 = arith.constant 0 : i32
    return %7, %arg1 : i32, i32
  }
  func.func @transform_2(%arg0: i32, %arg1: i32, %arg2: i32, %arg3: memref<1xi32, #tpu.memory_space<smem>>, %arg4: memref<1xi32, #tpu.memory_space<smem>>) -> (i32, i32) {
    %c0_i32 = arith.constant 0 : i32
    return %arg0, %arg1 : i32, i32
  }
}

</mosaic_0001>

<bundles_post_ra>
// kernel: tpu_custom_call.1
= control target key start
LH: loop header
LB: loop body
LE: loop exit
PB: predicated region body
PF: predicated region fallthrough
CT: control target
= control target key end

     0   :  { %11 = vsyncpa [#allocation6], 0  ;;  %s466_s0 = inlined_call_operand.<no memory space> [shape: s32[1], index: 0, kind: input, shape index: {}]   ;;  %s467_s1 = inlined_call_operand.<no memory space> [shape: s32[1], index: 1, kind: input, shape index: {}]   ;;  %s468_s2 = inlined_call_operand.vmem [shape: s32[1,128], index: 2, kind: input, shape index: {}]   ;;  %s469_s3 = inlined_call_operand.hbm [shape: f32[128,128], index: 3, kind: input, shape index: {}]   ;;  %s470_s4 = inlined_call_operand.hbm [shape: f32[8,128], index: 4, kind: output, shape index: {}]  }
   0x1   :  { %12 = vsyncpa [#allocation7], 0  ;;  %s238_s17 = sadd.s32 4294967295, %s467_s1  ;;  %s391_s18 = smov [#allocation5]  }
   0x2   :  { %p39_p0 = scmp.gt.s32.totalorder %s238_s17, 0  ;;  %s50_s19 = sshll.u32 %s391_s18, 4  ;;  %s51_s19 = int_to_ptr.vmem [resolvable:$true] %s50_s19 }
   0x3   :  { %s343_s30 = scalar_lea.hbm %s469_s3, 2048 }
   0x4   :  { %s472_s17 = smov (!%p39_p0, %s238_s17), 0 }
   0x5   :  { %s474_s17 = smov (%p39_p0, %s472_s17), 0 }
   0x6   :  { %s43_s22 = sadd.s32 %s474_s17, %s466_s0 }
   0x7   :  { %s252_s23 = sshll.u32 %s43_s22, 11 }
   0x8   :  { %s49_s26 = scalar_lea.hbm %s469_s3, %s252_s23 }
   0x9   :  { %s341_s27 = scalar_lea.hbm %s49_s26, 2048  ;;  %p344_p2 = scmp.lt.u32.totalorder %s49_s26, %s469_s3 }
   0xa   :  { %p342_p1 = scmp.ne.s32.totalorder %s49_s26, %s341_s27  ;;  %p345_p3 = scmp.lt.u32.totalorder %s343_s30, %s341_s27 }
   0xb   :  { %p347_p5 = scmp.lt.u32.totalorder %s341_s27, %s49_s26 }
   0xc   :  { %p346_p4 = por %p345_p3, %p344_p2 }
   0xe   :  { %p348_p6 = por %p347_p5, %p346_p4 }
  0x10   :  { %p349_p7 = pnand %p348_p6, %p342_p1 }
  0x12   :  { %352 = shalt.err (!%p349_p7)
}
  0x13   :  { %s353_s0 = scalar_lea.vmem %s51_s19, 2048  ;;  %p358_p9 = scmp.lt.s32.totalorder %s51_s19, %s51_s19 }
  0x14   :  { %p354_p8 = scmp.ne.s32.totalorder %s51_s19, %s353_s0  ;;  %p359_p10 = scmp.lt.s32.totalorder %s353_s0, %s353_s0 }
  0x16   :  { %p360_p11 = por %p359_p10, %p358_p9 }
  0x18   :  { %p361_p12 = pnand %p360_p11, %p354_p8 }
  0x1a   :  { %364 = shalt.err (!%p361_p12)
}
  0x1b   :  { %s392_s7 = smov 128   ;;  %s393_s8 = smov 8  }
  0x1c   :  { %56 = dma.hbm_to_vmem [thread:$0]  %s49_s26, 2048, %s51_s19, [#allocation6], %s392_s7, %s392_s7, %s393_s8  }
  0x1d   :  { %387 = dma.done.wait [#allocation6], 2048  }
  0x1e   :  { %388 = vsyncadd [#allocation6], 4294965248  ;;  %p79_p13 = scmp.lt.s32.totalorder %s43_s22, 0  ;;  %v394_v0 = vmov 0.0   ;;  %p245_p0 = scmp.le.s32.totalorder %s467_s1, 0 }
  0x1f   :  { %103 = vst [vmem:[#allocation8] sm:$0xff] %v394_v0  ;;  %v111_v1 = vld [vmem:[#allocation5] sm:$0xff] (!%p245_p0)  ;;  %v112_v2 = vld [vmem:[#allocation5 + $0x8] sm:$0xff] (!%p245_p0)  ;;  %v113_v3 = vld [vmem:[#allocation5 + $0x10] sm:$0xff] (!%p245_p0)  ;;  %v395_v4 = vmov (!%p245_p0), 0.0|0.0   ;;  %vm396_vm0 = vmmov (!%p245_p0), 0   ;;  %v127_v24 = vlaneseq (!%p245_p0) }
  0x20   :  { %s476_s22 = smov (!%p79_p13, %s43_s22), 0  ;;  %108 = sbr.rel (%p245_p0) target bundleno = 281 (0x119), region = 21 }
  0x21   :  { %s81_s10 = scalar_lea.vmem %s468_s2, %s476_s22  ;;  %308 = vmatprep.subr.bf16.mxu0 (!%p245_p0), %v395_v4  ;;  %v309_v5 = vpack.c.bf16 (!%p245_p0), %v112_v2, %v111_v1  ;;  %v114_v6 = vld [vmem:[#allocation5 + $0x18] sm:$0xff] (!%p245_p0)  ;;  %v397_v7 = vmov (!%p245_p0), 0.0   ;;  %v115_v9 = vld [vmem:[#allocation5 + $0x20] sm:$0xff] (!%p245_p0)  ;;  %v116_v10 = vld [vmem:[#allocation5 + $0x28] sm:$0xff] (!%p245_p0)  ;;  %v128_v28 = vshrl.u32 (!%p245_p0), %v127_v24, 7  ;;  %v398_v30 = vmov (!%p245_p0), 1.0  }
  0x22   :  { %305 = vmatprep.mubr.msk.f32.mxu0 (!%p245_p0), %vm396_vm0, %v397_v7  ;;  %v312_v8 = vpack.c.bf16 (!%p245_p0), %v114_v6, %v113_v3  ;;  %v315_v11 = vpack.c.bf16 (!%p245_p0), %v116_v10, %v115_v9  ;;  %v117_v12 = vld [vmem:[#allocation5 + $0x30] sm:$0xff] (!%p245_p0)  ;;  %v118_v13 = vld [vmem:[#allocation5 + $0x38] sm:$0xff] (!%p245_p0)  ;;  %v119_v15 = vld [vmem:[#allocation5 + $0x40] sm:$0xff] (!%p245_p0) }
  0x23   :  { %310 = vmatpush3.bf16.msra.mxu0 (!%p245_p0), %v309_v5  ;;  %v318_v14 = vpack.c.bf16 (!%p245_p0), %v118_v13, %v117_v12  ;;  %v120_v16 = vld [vmem:[#allocation5 + $0x48] sm:$0xff] (!%p245_p0)  ;;  %v121_v18 = vld [vmem:[#allocation5 + $0x50] sm:$0xff] (!%p245_p0)  ;;  %v122_v19 = vld [vmem:[#allocation5 + $0x58] sm:$0xff] (!%p245_p0) }
  0x24   :  { %311 = vmatprep.subr.bf16.mxu0 (!%p245_p0), %v395_v4  ;;  %v321_v17 = vpack.c.bf16 (!%p245_p0), %v120_v16, %v119_v15  ;;  %v324_v20 = vpack.c.bf16 (!%p245_p0), %v122_v19, %v121_v18  ;;  %v123_v21 = vld [vmem:[#allocation5 + $0x60] sm:$0xff] (!%p245_p0)  ;;  %v124_v22 = vld [vmem:[#allocation5 + $0x68] sm:$0xff] (!%p245_p0)  ;;  %v125_v25 = vld [vmem:[#allocation5 + $0x70] sm:$0xff] (!%p245_p0) }
  0x25   :  { %v327_v23 = vpack.c.bf16 (!%p245_p0), %v124_v22, %v123_v21  ;;  %v126_v26 = vld [vmem:[#allocation5 + $0x78] sm:$0xff] (!%p245_p0)  ;;  %v246_v29 = vld [vmem:[%s81_s10] ss:$0 sm:$0xff] (!%p245_p0) }
  0x26   :  { %v330_v27 = vpack.c.bf16 (!%p245_p0), %v126_v26, %v125_v25  ;;  %vm135_vm1 = vcmp.eq.s32.totalorder (!%p245_p0), %v128_v28, %v246_v29  ;;  %v138_v31 = vld [vmem:[#allocation8] sm:$0xff] (!%p245_p0) }
  0x27   :  { %313 = vmatpush3.bf16.msra.mxu0 %v312_v8 }
  0x28   :  { %314 = vmatprep.subr.bf16.mxu0 %v395_v4 }
  0x2b   :  { %316 = vmatpush3.bf16.msra.mxu0 %v315_v11 }
  0x2c   :  { %317 = vmatprep.subr.bf16.mxu0 %v395_v4 }
  0x2f   :  { %319 = vmatpush3.bf16.msra.mxu0 %v318_v14 }
  0x30   :  { %320 = vmatprep.subr.bf16.mxu0 %v395_v4 }
  0x33   :  { %322 = vmatpush3.bf16.msra.mxu0 %v321_v17 }
  0x34   :  { %323 = vmatprep.subr.bf16.mxu0 %v395_v4 }
  0x37   :  { %325 = vmatpush3.bf16.msra.mxu0 %v324_v20 }
  0x38   :  { %326 = vmatprep.subr.bf16.mxu0 %v395_v4 }
  0x3b   :  { %328 = vmatpush3.bf16.msra.mxu0 %v327_v23 }
  0x3c   :  { %329 = vmatprep.subr.bf16.mxu0 %v395_v4 }
  0x3f   :  { %331 = vmatpush3.bf16.msra.mxu0 %v330_v27 }
  0x42   :  { %306 = vmatmul.mubr.msk.f32.vlgmr.msra.gmra.mrb[0].mxu0 %vm135_vm1, %v398_v30 }
 0x115   :  { %v205_v32 = vpop.f32.mrb[0].mxu0 }
 0x116   :  { %v209_v33 = vadd.f32 %v205_v32, %v138_v31  ;;  %v307_v34 = vpop.f32.mrb[1].mxu0 }
 0x118   :  { %210 = vst [vmem:[#allocation8] sm:$0xff] %v209_v33 }
 0x119 PF:  { %s399_s14 = smov [#allocation8]  }
 0x11a   :  { %s223_s15 = sshll.u32 %s399_s14, 4  ;;  %s224_s15 = int_to_ptr.vmem [resolvable:$true] %s223_s15 }
 0x11b   :  { %s365_s16 = scalar_lea.vmem %s224_s15, 128  ;;  %p370_p2 = scmp.lt.s32.totalorder %s224_s15, %s224_s15 }
 0x11c   :  { %p366_p1 = scmp.ne.s32.totalorder %s224_s15, %s365_s16  ;;  %p371_p3 = scmp.lt.s32.totalorder %s365_s16, %s365_s16 }
 0x11e   :  { %p372_p4 = por %p371_p3, %p370_p2 }
 0x11f   :  { %v214_v35 = vld [vmem:[#allocation8] sm:$0xff] }
 0x120   :  { %v215_v36 = vmul.f32 0.35355338, %v214_v35  ;;  %p373_p5 = pnand %p372_p4, %p366_p1 }
 0x122   :  { %216 = vst [vmem:[#allocation8] sm:$0xff] %v215_v36 }
 0x123   :  { %376 = shalt.err (!%p373_p5)
}
 0x124   :  { %s377_s18 = scalar_lea.hbm %s470_s4, 128 }
 0x125   :  { %p378_p6 = scmp.ne.s32.totalorder %s470_s4, %s377_s18  ;;  %p381_p7 = scmp.lt.u32.totalorder %s377_s18, %s470_s4 }
 0x127   :  { %p383_p8 = pnand %p381_p7, %p378_p6 }
 0x129   :  { %386 = shalt.err (!%p383_p8)
}
 0x12a   :  { %226 = dma.vmem_to_hbm [thread:$0]  %s224_s15, 128, %s470_s4, [#allocation7]  }
 0x12b   :  { %389 = dma.done.wait [#allocation7], 128  }
 0x12c   :  { %390 = vsyncadd [#allocation7], 4294967168 }
 0x12d   :  { %230 = vsyncpa [#allocation6], 1 }
 0x12e   :  { %231 = vsyncpa [#allocation7], 1 }

</bundles_post_ra>
